<compile_context>
chip_gen: v6e
topology: v6e:2x2x1
jax: 0.10.0
libtpu: 0.0.40
codegen_flags: <defaults>
</compile_context>

<pallas_src>
import functools

import jax
import jax.numpy as jnp
import numpy as np
from jax.experimental import pallas as pl
from jax.experimental.pallas import tpu as pltpu

_LANE = 128  # TPU lane width; output embed dim is padded up to a multiple.


def _round_up(x, m):
    return (x + m - 1) // m * m


def _pad_rows(x, mult):
    """Zero-pad leading (batch) dim up to a multiple of `mult`."""
    pad = (-x.shape[0]) % mult
    if pad:
        x = jnp.pad(x, ((0, pad),) + ((0, 0),) * (x.ndim - 1))
    return x


def _pick_row_tile(rows, block_b):
    """Sublane-aligned row tile; aims for >=2 grid steps (v7x megacore)."""
    return min(block_b, max(8, _round_up(pl.cdiv(rows, 2), 8)))


# ---------------------------------------------------------------------------
# Kernels
# ---------------------------------------------------------------------------
def _project_kernel(x_ref, w_ref, o_ref):
    """Bias-free linear projection (image/sketch path).

    x_ref: [TB, C]     bfloat16 (pooled backbone features, lane-dense)
    w_ref: [C, E_pad]  bfloat16 (projection weight, pre-transposed, E_pad%128==0)
    o_ref: [TB, E_pad] float32
    """
    o_ref[...] = jnp.dot(x_ref[...], w_ref[...],
                         preferred_element_type=jnp.float32)  # MXU, f32 acc


def _encode_text_kernel(cls_ref, wp_ref, bp_ref, wt_ref, o_ref):
    """RoBERTa-style pooler tanh(CLS @ Wp + bp) + bias-free text projection.

    cls_ref: [TB, H] bf16   wp_ref: [H, H] bf16   bp_ref: [1, H] f32
    wt_ref:  [H, E_pad] bf16   o_ref: [TB, E_pad] f32
    """
    pooled = jnp.dot(cls_ref[...], wp_ref[...],
                     preferred_element_type=jnp.float32) + bp_ref[...]
    pooled = jnp.tanh(pooled)                                  # f32 tanh (EUP)
    o_ref[...] = jnp.dot(pooled.astype(jnp.bfloat16), wt_ref[...],
                         preferred_element_type=jnp.float32)


# ---------------------------------------------------------------------------
# Wrappers
# ---------------------------------------------------------------------------
def project_features(x_bf16, w_bf16, *, block_b=256):
    """x_bf16: [rows, C] pooled features -> padded projections [rows, E_pad] f32."""
    rows, C = x_bf16.shape
    e_pad = w_bf16.shape[1]
    tb = _pick_row_tile(rows, block_b)          # >=2 grid steps when rows allow
    x = _pad_rows(x_bf16, tb)
    rp = x.shape[0]
    out = pl.pallas_call(
        _project_kernel,
        out_shape=jax.ShapeDtypeStruct((rp, e_pad), jnp.float32),
        grid=(rp // tb,),
        in_specs=[
            pl.BlockSpec((tb, C), lambda i: (i, 0)),      # pipelined over batch
            pl.BlockSpec((C, e_pad), lambda i: (0, 0)),   # weight resident in VMEM
        ],
        out_specs=pl.BlockSpec((tb, e_pad), lambda i: (i, 0)),  # lane-dense store
        compiler_params=pltpu.CompilerParams(
            dimension_semantics=("parallel",)),           # megacore on v7x
    )(x, w_bf16)
    return out[:rows]


def encode_text(text_hidden, pooler_w_bf16, pooler_b, w_txt_bf16, *, block_b=256):
    """text_hidden: [B, S, H] last-hidden-states -> padded features [B, E_pad] f32."""
    B, S, Hd = text_hidden.shape
    e_pad = w_txt_bf16.shape[1]
    # CLS gather stays in the wrapper (a (TB,1,H) block would violate the
    # 8-sublane tile rule); only the [B, H] CLS rows are DMA'd, in bf16.
    cls = text_hidden[:, 0, :].astype(jnp.bfloat16)
    tb = _pick_row_tile(B, block_b)
    cls = _pad_rows(cls, tb)
    bp = cls.shape[0]
    out = pl.pallas_call(
        _encode_text_kernel,
        out_shape=jax.ShapeDtypeStruct((bp, e_pad), jnp.float32),
        grid=(bp // tb,),
        in_specs=[
            pl.BlockSpec((tb, Hd), lambda i: (i, 0)),
            pl.BlockSpec((Hd, Hd), lambda i: (0, 0)),   # pooler weight resident
            pl.BlockSpec((1, Hd), lambda i: (0, 0)),    # bias as (1,H) row
            pl.BlockSpec((Hd, e_pad), lambda i: (0, 0)),
        ],
        out_specs=pl.BlockSpec((tb, e_pad), lambda i: (i, 0)),
        compiler_params=pltpu.CompilerParams(
            dimension_semantics=("parallel",)),
    )(cls, pooler_w_bf16, pooler_b, w_txt_bf16)
    return out[:B]


@functools.partial(jax.jit, static_argnames=("embed_dim", "include_sketch"))
def koclip_forward(image, text_hidden, sketch, params, *, embed_dim,
                   include_sketch=False):
    """Mirrors KoCLIP.forward: returns (image_features, text_features).

    The two pallas_calls execute sequentially on the TensorCore; the visual
    path dominates, and its HBM traffic is minimized (pool fused upstream,
    bf16 activations, sketch gated off by default since its features are
    discarded by the source forward).
    """
    B = image.shape[0]
    # Backbone stand-in: global average pool of the NCHW feature map.  Done in
    # the wrapper so XLA fuses it into the producer — no transpose copy, and
    # the kernel's input DMA shrinks from [B, HW, C] to [B, C].
    pooled_img = jnp.mean(image, axis=(2, 3)).astype(jnp.bfloat16)
    if include_sketch:
        # Faithful-to-source mode: sketch is encoded through the same single
        # projection call (one weight DMA) and then discarded, as in forward().
        pooled_skt = jnp.mean(sketch, axis=(2, 3)).astype(jnp.bfloat16)
        vis_in = jnp.concatenate([pooled_img, pooled_skt], axis=0)
    else:
        vis_in = pooled_img
    vis_feat = project_features(vis_in, params["w_img_t"])       # [rows, E_pad]
    image_features = vis_feat[:B, :embed_dim]
    text_features = encode_text(
        text_hidden, params["pooler_w"], params["pooler_b"], params["w_txt_t"]
    )[:, :embed_dim]
    return image_features, text_features


# ---------------------------------------------------------------------------
# Deterministic parameter init + demo
# ---------------------------------------------------------------------------
def init_params(key, final_dim, hidden_size, embed_dim):
    e_pad = _round_up(embed_dim, _LANE)
    k1, k2, k3, k4 = jax.random.split(key, 4)
    # nn.Linear(final_dim, embed_dim, bias=False): weight [embed_dim, final_dim]
    w_img = jax.random.normal(k1, (embed_dim, final_dim), jnp.float32) * 0.02
    w_txt = jax.random.normal(k2, (embed_dim, hidden_size), jnp.float32) * 0.02
    pooler_w = jax.random.normal(k3, (hidden_size, hidden_size), jnp.float32) * 0.02
    pooler_b = jax.random.normal(k4, (hidden_size,), jnp.float32) * 0.02
    # Pre-transpose to x @ W form and zero-pad embed dim to a lane multiple.
    w_img_t = jnp.zeros((final_dim, e_pad), jnp.float32).at[:, :embed_dim].set(w_img.T)
    w_txt_t = jnp.zeros((hidden_size, e_pad), jnp.float32).at[:, :embed_dim].set(w_txt.T)
    return {
        "w_img_t": w_img_t.astype(jnp.bfloat16),                 # [final_dim, E_pad]
        "w_txt_t": w_txt_t.astype(jnp.bfloat16),                 # [hidden,    E_pad]
        "pooler_w": pooler_w.T.astype(jnp.bfloat16),             # [hidden, hidden]
        "pooler_b": pooler_b.reshape(1, hidden_size).astype(jnp.float32),
        "logit_scale": jnp.array(np.log(1.0 / 0.07), jnp.float32),  # unused in forward
    }


if __name__ == "__main__":
    B, C_VIS, H, W = 2, 32, 8, 8         # final_dim = 32 (stand-in for 2048)
    SEQ, HIDDEN = 8, 32                  # roberta hidden stand-in
    EMBED = 16

    key = jax.random.PRNGKey(0)
    k_img, k_txt, k_skt, k_prm = jax.random.split(key, 4)

    image = jax.random.normal(k_img, (B, C_VIS, H, W), jnp.float32)
    sketch = jax.random.normal(k_skt, (B, C_VIS, H, W), jnp.float32)
    text_hidden = jax.random.normal(k_txt, (B, SEQ, HIDDEN), jnp.float32)

    params = init_params(k_prm, C_VIS, HIDDEN, EMBED)

    img_feat, txt_feat = koclip_forward(image, text_hidden, sketch, params,
                                        embed_dim=EMBED)
    jax.block_until_ready((img_feat, txt_feat))

    assert img_feat.shape == (B, EMBED) and img_feat.dtype == jnp.float32
    assert txt_feat.shape == (B, EMBED) and txt_feat.dtype == jnp.float32

    # Pure-JAX reference (mirrors the kernel's bf16-input / f32-accum matmuls).
    pooled_ref = jnp.mean(image, axis=(2, 3)).astype(jnp.bfloat16)
    ref_img = jnp.dot(pooled_ref, params["w_img_t"],
                      preferred_element_type=jnp.float32)[:, :EMBED]
    cls_ref = text_hidden[:, 0, :].astype(jnp.bfloat16)
    pre = jnp.dot(cls_ref, params["pooler_w"],
                  preferred_element_type=jnp.float32) + params["pooler_b"]
    ref_txt = jnp.dot(jnp.tanh(pre).astype(jnp.bfloat16), params["w_txt_t"],
                      preferred_element_type=jnp.float32)[:, :EMBED]

    np.testing.assert_allclose(np.asarray(img_feat), np.asarray(ref_img),
                               rtol=1e-2, atol=1e-3)
    np.testing.assert_allclose(np.asarray(txt_feat), np.asarray(ref_txt),
                               rtol=1e-2, atol=1e-3)

    print("KERNEL_OK")
</pallas_src>

<mosaic_0001>
module attributes {stable_mosaic.version = 11 : i64} {
  func.func @_project_kernel(%arg0: i32, %arg1: memref<8x32xbf16, #tpu.memory_space<vmem>>, %arg2: memref<32x128xbf16, #tpu.memory_space<vmem>>, %arg3: memref<8x128xf32, #tpu.memory_space<vmem>>) attributes {dimension_semantics = [#tpu.dimension_semantics<parallel>], iteration_bounds = array<i64: 1>, scalar_prefetch = 0 : i64, scratch_operands = 0 : i64, tpu.core_type = #tpu.core_type<tc>, window_params = [{transform_indices = @transform_0, window_bounds = array<i64: 8, 32>}, {pipeline_mode = #tpu.pipeline_mode<synchronous>, transform_indices = @transform_1, window_bounds = array<i64: 32, 128>}, {transform_indices = @transform_2, window_bounds = array<i64: 8, 128>}]} {
    %c0 = arith.constant 0 : index
    %c0_0 = arith.constant 0 : index
    %0 = vector.load %arg1[%c0, %c0_0] : memref<8x32xbf16, #tpu.memory_space<vmem>>, vector<8x32xbf16>
    %c0_1 = arith.constant 0 : index
    %c0_2 = arith.constant 0 : index
    %1 = vector.load %arg2[%c0_1, %c0_2] : memref<32x128xbf16, #tpu.memory_space<vmem>>, vector<32x128xbf16>
    %cst = arith.constant dense<0.000000e+00> : vector<8x128xf32>
    %2 = tpu.matmul %0, %1, %cst {dimension_numbers = #tpu.dot_dimension_numbers<[1], [0], [0], [1], [0, 0, 1, 1], [], []>} : vector<8x32xbf16>, vector<32x128xbf16>, vector<8x128xf32> -> vector<8x128xf32>
    %c0_3 = arith.constant 0 : index
    %c0_4 = arith.constant 0 : index
    %3 = vector.load %arg3[%c0_3, %c0_4] : memref<8x128xf32, #tpu.memory_space<vmem>>, vector<8x128xf32>
    tpu.vector_store %arg3[%c0_3, %c0_4], %2 {strides = array<i32>} : memref<8x128xf32, #tpu.memory_space<vmem>>, vector<8x128xf32>,
    return
  }
  func.func @transform_0(%arg0: i32) -> (i32, i32) {
    %c0_i32 = arith.constant 0 : i32
    %c0_i32_0 = arith.constant 0 : i32
    return %arg0, %c0_i32 : i32, i32
  }
  func.func @transform_1(%arg0: i32) -> (i32, i32) {
    %c0_i32 = arith.constant 0 : i32
    %c0_i32_0 = arith.constant 0 : i32
    %c0_i32_1 = arith.constant 0 : i32
    return %c0_i32, %c0_i32_0 : i32, i32
  }
  func.func @transform_2(%arg0: i32) -> (i32, i32) {
    %c0_i32 = arith.constant 0 : i32
    %c0_i32_0 = arith.constant 0 : i32
    return %arg0, %c0_i32 : i32, i32
  }
}

module attributes {stable_mosaic.version = 11 : i64} {
  func.func @_encode_text_kernel(%arg0: i32, %arg1: memref<8x32xbf16, #tpu.memory_space<vmem>>, %arg2: memref<32x32xbf16, #tpu.memory_space<vmem>>, %arg3: memref<1x32xf32, #tpu.memory_space<vmem>>, %arg4: memref<32x128xbf16, #tpu.memory_space<vmem>>, %arg5: memref<8x128xf32, #tpu.memory_space<vmem>>) attributes {dimension_semantics = [#tpu.dimension_semantics<parallel>], iteration_bounds = array<i64: 1>, scalar_prefetch = 0 : i64, scratch_operands = 0 : i64, tpu.core_type = #tpu.core_type<tc>, window_params = [{transform_indices = @transform_0, window_bounds = array<i64: 8, 32>}, {pipeline_mode = #tpu.pipeline_mode<synchronous>, transform_indices = @transform_1, window_bounds = array<i64: 32, 32>}, {pipeline_mode = #tpu.pipeline_mode<synchronous>, transform_indices = @transform_2, window_bounds = array<i64: 1, 32>}, {pipeline_mode = #tpu.pipeline_mode<synchronous>, transform_indices = @transform_3, window_bounds = array<i64: 32, 128>}, {transform_indices = @transform_4, window_bounds = array<i64: 8, 128>}]} {
    %c0 = arith.constant 0 : index
    %c0_0 = arith.constant 0 : index
    %0 = vector.load %arg1[%c0, %c0_0] : memref<8x32xbf16, #tpu.memory_space<vmem>>, vector<8x32xbf16>
    %c0_1 = arith.constant 0 : index
    %c0_2 = arith.constant 0 : index
    %1 = vector.load %arg2[%c0_1, %c0_2] : memref<32x32xbf16, #tpu.memory_space<vmem>>, vector<32x32xbf16>
    %cst = arith.constant dense<0.000000e+00> : vector<8x32xf32>
    %2 = tpu.matmul %0, %1, %cst {dimension_numbers = #tpu.dot_dimension_numbers<[1], [0], [0], [1], [0, 0, 1, 1], [], []>} : vector<8x32xbf16>, vector<32x32xbf16>, vector<8x32xf32> -> vector<8x32xf32>
    %c0_3 = arith.constant 0 : index
    %c0_4 = arith.constant 0 : index
    %3 = vector.load %arg3[%c0_3, %c0_4] : memref<1x32xf32, #tpu.memory_space<vmem>>, vector<1x32xf32>
    %4 = vector.broadcast %3 : vector<1x32xf32> to vector<8x32xf32>
    %5 = arith.addf %2, %4 : vector<8x32xf32>
    %6 = math.tanh %5 : vector<8x32xf32>
    %7 = arith.truncf %6 : vector<8x32xf32> to vector<8x32xbf16>
    %c0_5 = arith.constant 0 : index
    %c0_6 = arith.constant 0 : index
    %8 = vector.load %arg4[%c0_5, %c0_6] : memref<32x128xbf16, #tpu.memory_space<vmem>>, vector<32x128xbf16>
    %cst_7 = arith.constant dense<0.000000e+00> : vector<8x128xf32>
    %9 = tpu.matmul %7, %8, %cst_7 {dimension_numbers = #tpu.dot_dimension_numbers<[1], [0], [0], [1], [0, 0, 1, 1], [], []>} : vector<8x32xbf16>, vector<32x128xbf16>, vector<8x128xf32> -> vector<8x128xf32>
    %c0_8 = arith.constant 0 : index
    %c0_9 = arith.constant 0 : index
    %10 = vector.load %arg5[%c0_8, %c0_9] : memref<8x128xf32, #tpu.memory_space<vmem>>, vector<8x128xf32>
    tpu.vector_store %arg5[%c0_8, %c0_9], %9 {strides = array<i32>} : memref<8x128xf32, #tpu.memory_space<vmem>>, vector<8x128xf32>,
    return
  }
  func.func @transform_0(%arg0: i32) -> (i32, i32) {
    %c0_i32 = arith.constant 0 : i32
    %c0_i32_0 = arith.constant 0 : i32
    return %arg0, %c0_i32 : i32, i32
  }
  func.func @transform_1(%arg0: i32) -> (i32, i32) {
    %c0_i32 = arith.constant 0 : i32
    %c0_i32_0 = arith.constant 0 : i32
    %c0_i32_1 = arith.constant 0 : i32
    return %c0_i32, %c0_i32_0 : i32, i32
  }
  func.func @transform_2(%arg0: i32) -> (i32, i32) {
    %c0_i32 = arith.constant 0 : i32
    %c0_i32_0 = arith.constant 0 : i32
    %c0_i32_1 = arith.constant 0 : i32
    return %c0_i32, %c0_i32_0 : i32, i32
  }
  func.func @transform_3(%arg0: i32) -> (i32, i32) {
    %c0_i32 = arith.constant 0 : i32
    %c0_i32_0 = arith.constant 0 : i32
    %c0_i32_1 = arith.constant 0 : i32
    return %c0_i32, %c0_i32_0 : i32, i32
  }
  func.func @transform_4(%arg0: i32) -> (i32, i32) {
    %c0_i32 = arith.constant 0 : i32
    %c0_i32_0 = arith.constant 0 : i32
    return %arg0, %c0_i32 : i32, i32
  }
}

</mosaic_0001>

<bundles_post_ra>
// kernel: koclip_forward.2
= control target key start
LH: loop header
LB: loop body
LE: loop exit
PB: predicated region body
PF: predicated region fallthrough
CT: control target
= control target key end

     0   :  { %v96_v0 = vmov 0.0   ;;  %vm97_vm0 = vmmov 0   ;;  %vm29_vm1 = vcmask 261120   ;;  %s125_s1 = inlined_call_operand.vmem [shape: bf16[32,128], index: 1, kind: input, shape index: {}]   ;;  %s126_s0 = inlined_call_operand.vmem [shape: bf16[8,32], index: 0, kind: input, shape index: {}]   ;;  %s127_s2 = inlined_call_operand.vmem [shape: f32[8,128], index: 2, kind: output, shape index: {}]  }
   0x1   :  { %84 = vmatprep.subr.bf16.mxu0 %v96_v0  ;;  %v94_v1 = vld [vmem:[%s125_s1 + $0x8] sm:$0xff]   ;;  %88 = vmatprep.mubr.msk.bf16.mxu0 %vm97_vm0, %v96_v0  ;;  %v95_v2 = vld [vmem:[%s125_s1] sm:$0xff]  }
   0x2   :  { %85 = vmatpush3.bf16.msra.mxu0 %v94_v1  ;;  %v12_v3 = vld [vmem:[%s126_s0] sm:$0xf] }
   0x3   :  { %86 = vmatprep.subr.bf16.mxu0 %v96_v0 }
   0x6   :  { %87 = vmatpush3.bf16.msra.mxu0 %v95_v2 }
   0x9   :  { %89 = vmatmul.mubr.msk.bf16.vlgmr.msra.gmra.mxu0 %vm29_vm1, %v12_v3 }
  0xc9   :  { %v67_v4 = vpop.f32.mrf.mxu0 }
  0xca   :  { %73 = vst [vmem:[%s127_s2] sm:$0xff] %v67_v4 }
  0xcb   :  { %v90_v5 = vpop.f32.mrf.mxu0 }
  0xcd   :  { %v70_v6 = vpop.f32.mrf.mxu0 }
  0xcf   :  { %v91_v7 = vpop.f32.mrf.mxu0 }

// kernel: koclip_forward.3
= control target key start
LH: loop header
LB: loop body
LE: loop exit
PB: predicated region body
PF: predicated region fallthrough
CT: control target
= control target key end

     0   :  { %v189_v0 = vmov 0.0   ;;  %vm190_vm0 = vmmov 0   ;;  %vm42_vm1 = vcmask 261120   ;;  %s239_s1 = inlined_call_operand.vmem [shape: bf16[32,32], index: 1, kind: input, shape index: {}]   ;;  %s240_s0 = inlined_call_operand.vmem [shape: bf16[8,32], index: 0, kind: input, shape index: {}]   ;;  %s241_s3 = inlined_call_operand.vmem [shape: bf16[32,128], index: 3, kind: input, shape index: {}]   ;;  %s242_s2 = inlined_call_operand.vmem [shape: f32[1,32], index: 2, kind: input, shape index: {}]   ;;  %s243_s4 = inlined_call_operand.vmem [shape: f32[8,128], index: 4, kind: output, shape index: {}]  }
   0x1   :  { %165 = vmatprep.subr.bf16.mxu0 %v189_v0  ;;  %v183_v1 = vld [vmem:[%s239_s1 + $0x8] sm:$0xff]   ;;  %169 = vmatprep.mubr.msk.bf16.mxu0 %vm190_vm0, %v189_v0  ;;  %v184_v2 = vld [vmem:[%s239_s1] sm:$0xff]  }
   0x2   :  { %173 = vmatprep.subr.bf16.mxu1 %v189_v0  ;;  %177 = vmatprep.mubr.msk.bf16.mxu1 %vm190_vm0, %v189_v0  ;;  %v18_v3 = vld [vmem:[%s240_s0] sm:$0xf]  ;;  %v185_v4 = vld [vmem:[%s241_s3 + $0x8] sm:$0xff]  }
   0x3   :  { %166 = vmatpush3.bf16.msra.mxu0 %v183_v1  ;;  %174 = vmatpush3.bf16.msra.mxu1 %v185_v4  ;;  %v186_v5 = vld [vmem:[%s241_s3] sm:$0xff]  }
   0x4   :  { %167 = vmatprep.subr.bf16.mxu0 %v189_v0  ;;  %175 = vmatprep.subr.bf16.mxu1 %v189_v0  ;;  %v152_v6 = vld [vmem:[%s242_s2] ss:$0 sm:$0xff] }
   0x7   :  { %168 = vmatpush3.bf16.msra.mxu0 %v184_v2  ;;  %176 = vmatpush3.bf16.msra.mxu1 %v186_v5 }
   0xa   :  { %170 = vmatmul.mubr.msk.bf16.vlgmr.msra.gmra.mxu0 %vm42_vm1, %v18_v3 }
  0xca   :  { %v80_v7 = vpop.f32.mrf.mxu0 }
  0xcb   :  { %v81_v8 = vadd.f32 %v152_v6, %v80_v7 }
  0xcc   :  { %v171_v9 = vpop.f32.mrf.mxu0 }
  0xcd   :  { %187 = vtanh.f32 %v81_v8 }
  0xce   :  { %v83_v10 = vpop.f32.mrf.mxu0 }
  0xd0   :  { %v172_v11 = vpop.f32.mrf.mxu0 }
  0xda   :  { %v188_v12 = vpop.eup %187 }
  0xdb   :  { %v87_v13 = vpack.c.bf16 %v188_v12, %v188_v12 }
  0xdd   :  { %178 = vmatmul.mubr.msk.bf16.vlgmr.msra.gmra.mxu1 %vm42_vm1, %v87_v13 }
 0x19d   :  { %v141_v14 = vpop.f32.mrf.mxu1 }
 0x19e   :  { %147 = vst [vmem:[%s243_s4] sm:$0xff] %v141_v14 }
 0x19f   :  { %v179_v15 = vpop.f32.mrf.mxu1 }
 0x1a1   :  { %v144_v16 = vpop.f32.mrf.mxu1 }
 0x1a3   :  { %v180_v17 = vpop.f32.mrf.mxu1 }

</bundles_post_ra>
